<compile_context>
chip_gen: v6e
topology: v6e:2x2x1
jax: 0.10.0
libtpu: 0.0.40
codegen_flags: <defaults>
</compile_context>

<pallas_src>
import math
from functools import partial

import jax
import jax.numpy as jnp
from jax import lax
from jax.experimental import pallas as pl
from jax.experimental.pallas import tpu as pltpu

_MB = 1024 * 1024


# ----------------------------------------------------------------------------
# Chip-aware helpers
# ----------------------------------------------------------------------------
def _vmem_capacity_bytes():
    try:
        cap = getattr(pltpu.get_tpu_info(), "vmem_capacity_bytes", None)
        if cap:
            return int(cap)
    except Exception:
        pass
    return 64 * _MB  # conservative default (v7x per-TensorCore VMEM)


def _vmem_limit_bytes(plan_bytes, cap):
    # Generous headroom over the block plan, clamped below physical VMEM.
    return int(min(0.9 * cap, max(32 * _MB, 1.5 * plan_bytes + 4 * _MB)))


def _divisor_tiles(n, candidates):
    tiles = [c for c in candidates if n % c == 0]
    return tiles if tiles else [n]


# ----------------------------------------------------------------------------
# Kernel 1: tiled linear  y = x @ W^T + b   (QKV projection, W in [out, in] layout)
# ----------------------------------------------------------------------------
def _linear_kernel(x_ref, w_ref, b_ref, o_ref):
    # x: [bm, K]; w: [bn, K] (PyTorch nn.Linear layout, no wrapper transpose); b: [1, bn]
    acc = lax.dot_general(
        x_ref[...], w_ref[...],
        dimension_numbers=(((1,), (1,)), ((), ())),   # contract K with K (trans-B matmul)
        preferred_element_type=jnp.float32)
    o_ref[...] = acc + b_ref[...]


def _linear_plan_bytes(bm, bn, K, in_bytes):
    return (2 * (bm * K + bn * K) * in_bytes   # x / w double-buffered
            + 2 * bn * 4                       # bias
            + 2 * bm * bn * 4                  # output double-buffered
            + bm * bn * 4)                     # live accumulator


def linear_pallas(x, w, b):
    """x: [M, K], w: [N, K] (PyTorch [out, in]), b: [N] -> [M, N] float32 (f32 accumulation)."""
    M, K = x.shape
    N = w.shape[0]
    in_bytes = jnp.dtype(x.dtype).itemsize
    cap = _vmem_capacity_bytes()
    budget = int(0.6 * cap)

    bm_cands = _divisor_tiles(M, (512, 256, 128, 64, 32, 16, 8))
    bn_cands = _divisor_tiles(N, (1024, 512, 256, 128))   # lane-dense weight/output tiles
    bm, bn = bm_cands[-1], bn_cands[-1]
    done = False
    for cand_m in bm_cands:
        for cand_n in bn_cands:
            if _linear_plan_bytes(cand_m, cand_n, K, in_bytes) <= budget:
                bm, bn = cand_m, cand_n
                done = True
                break
        if done:
            break
    # TODO(synk): add a K grid axis + f32 VMEM accumulator (pl.when init/finalize) for very large K.
    plan = _linear_plan_bytes(bm, bn, K, in_bytes)

    return pl.pallas_call(
        _linear_kernel,
        out_shape=jax.ShapeDtypeStruct((M, N), jnp.float32),
        grid=(M // bm, N // bn),
        in_specs=[
            pl.BlockSpec((bm, K), lambda i, j: (i, 0)),   # x rows (invariant across j)
            pl.BlockSpec((bn, K), lambda i, j: (j, 0)),   # weight column-tile (streams over j)
            pl.BlockSpec((1, bn), lambda i, j: (0, j)),   # bias tile
        ],
        out_specs=pl.BlockSpec((bm, bn), lambda i, j: (i, j)),
        compiler_params=pltpu.CompilerParams(
            dimension_semantics=("parallel", "parallel"),
            vmem_limit_bytes=_vmem_limit_bytes(plan, cap)),
    )(x, w, b.reshape(1, N).astype(jnp.float32))


# ----------------------------------------------------------------------------
# Kernel 2: flash-style attention (all heads per grid step) + fused dense projection
# ----------------------------------------------------------------------------
def _flash_attention_dense_kernel(q_ref, k_ref, v_ref, m_ref, wd_ref, bd_ref,
                                  o_ref, m_scr, l_scr, acc_scr, *, scale):
    # q_ref:  [nh, tq, hd]   (invariant across the k grid axis -> fetched once per (b, qi))
    # k_ref / v_ref: [nh, tk, hd]  (streamed k-blocks)
    # m_ref:  [tq, tk] int8 (1 = keep, 0 = masked) -- shared across heads
    # wd_ref: [nh, hd, H] dense W^T split per head (grid-invariant)
    # bd_ref: [1, H]
    # o_ref:  [tq, H] f32, lane-dense, written only on the last k-block
    # scratch: m_scr / l_scr [nh, tq, 1] f32, acc_scr [nh, tq, hd] f32 (online softmax state)
    ki = pl.program_id(2)

    @pl.when(ki == 0)
    def _init():
        m_scr[...] = jnp.full_like(m_scr, -jnp.inf)
        l_scr[...] = jnp.zeros_like(l_scr)
        acc_scr[...] = jnp.zeros_like(acc_scr)

    # Pre-scale q: nh*tq*hd multiplies instead of nh*tq*tk on the scores.
    q = q_ref[...] * scale
    k = k_ref[...]
    v = v_ref[...]

    # scores[h, q, k]: head-batched MXU contraction over head_dim, f32 accumulation.
    s = jnp.einsum("hqd,hkd->hqk", q, k, preferred_element_type=jnp.float32)

    # Additive mask bias: one select per [tq, tk] element, one add per score element.
    bias = jnp.where(m_ref[...] != 0, 0.0, -10000.0).astype(jnp.float32)
    s = s + bias[None, :, :]

    # Online softmax update (flash-style); statistics stay in f32.
    m_prev = m_scr[...]
    m_new = jnp.maximum(m_prev, jnp.max(s, axis=-1, keepdims=True))
    alpha = jnp.exp(m_prev - m_new)
    p = jnp.exp(s - m_new)
    l_scr[...] = alpha * l_scr[...] + jnp.sum(p, axis=-1, keepdims=True)
    acc_scr[...] = alpha * acc_scr[...] + jnp.einsum(
        "hqk,hkd->hqd", p.astype(v.dtype), v, preferred_element_type=jnp.float32)
    m_scr[...] = m_new

    @pl.when(ki == pl.num_programs(2) - 1)
    def _finalize():
        # Normalize with the EUP approximate reciprocal (not a VALU divide).
        ctx = acc_scr[...] * pl.reciprocal(l_scr[...], approx=True)   # [nh, tq, hd] f32
        ctx = ctx.astype(wd_ref.dtype)
        wd = wd_ref[...]
        nh = ctx.shape[0]
        tq = o_ref.shape[0]
        H = o_ref.shape[1]
        # Fused output projection: per-head accumulate into ONE [tq, H] f32 tile
        # (no [nh, tq, H] intermediate), stored lane-dense in [B, S, H] layout.
        out = jnp.zeros((tq, H), jnp.float32)
        for h in range(nh):
            out = out + jnp.dot(ctx[h], wd[h], preferred_element_type=jnp.float32)
        o_ref[...] = out + bd_ref[...]


def _attention_plan_bytes(nh, tq, tk, hd, H, in_bytes):
    q = 2 * nh * tq * hd * in_bytes            # q double-buffered
    kv = 2 * 2 * nh * tk * hd * in_bytes       # k + v double-buffered
    msk = 2 * tq * tk                          # int8 mask
    wd = 2 * nh * hd * H * in_bytes            # dense weight (grid-invariant)
    bd = 2 * H * 4
    out = 2 * tq * H * 4
    scr = nh * tq * (hd + 2) * 4               # m / l / acc scratch
    live = 3 * nh * tq * tk * 4 + tq * H * 4   # scores / exp transients + projection acc
    return q + kv + msk + wd + bd + out + scr + live


def _attention_tiles(nh, S, hd, H, in_bytes, budget):
    # tq: multiple of 8 (sublane) dividing S; tk: multiple of 128 (lane, for the int8
    # mask block's minor dim) dividing S; otherwise fall back to full S.
    tq_cands = _divisor_tiles(S, (512, 256, 128, 64, 32, 16, 8))
    tk_cands = _divisor_tiles(S, (1024, 512, 256, 128))
    for tq in tq_cands:                       # prefer large tq (fewer K/V re-reads from HBM)
        for tk in tk_cands:
            if _attention_plan_bytes(nh, tq, tk, hd, H, in_bytes) <= budget:
                return tq, tk
    # TODO(synk): pad/mask awkward sequence lengths instead of falling back to small tiles.
    return tq_cands[-1], tk_cands[-1]


def attention_dense_pallas(q, k, v, mask_i8, w_dense_3d, b_dense, norm_factor,
                           tq=None, tk=None):
    """q/k/v: [B, nh, S, hd]; mask_i8: [B, S, S] int8; w_dense_3d: [nh, hd, H];
    b_dense: [1, H] f32 -> [B, S, H] float32 (flash attention + fused output projection)."""
    B, nh, S, hd = q.shape
    H = nh * hd
    in_bytes = jnp.dtype(q.dtype).itemsize
    cap = _vmem_capacity_bytes()
    if tq is None or tk is None:
        tq, tk = _attention_tiles(nh, S, hd, H, in_bytes, int(0.6 * cap))
    assert S % tq == 0 and S % tk == 0

    kernel = partial(_flash_attention_dense_kernel, scale=1.0 / norm_factor)
    plan = _attention_plan_bytes(nh, tq, tk, hd, H, in_bytes)

    # TODO(synk): single-buffer the grid-invariant wd/bias blocks (pipeline_mode=pl.Buffered(1))
    # once that BlockSpec option is verified on this toolchain; it halves their VMEM footprint.
    return pl.pallas_call(
        kernel,
        out_shape=jax.ShapeDtypeStruct((B, S, H), jnp.float32),
        grid=(B, S // tq, S // tk),
        in_specs=[
            pl.BlockSpec((None, nh, tq, hd), lambda b, qi, ki: (b, 0, qi, 0)),  # q (k-invariant)
            pl.BlockSpec((None, nh, tk, hd), lambda b, qi, ki: (b, 0, ki, 0)),  # k block
            pl.BlockSpec((None, nh, tk, hd), lambda b, qi, ki: (b, 0, ki, 0)),  # v block
            pl.BlockSpec((None, tq, tk),     lambda b, qi, ki: (b, qi, ki)),    # mask (int8, per batch)
            pl.BlockSpec((nh, hd, H),        lambda b, qi, ki: (0, 0, 0)),      # dense W (grid-invariant)
            pl.BlockSpec((1, H),             lambda b, qi, ki: (0, 0)),         # dense bias
        ],
        out_specs=pl.BlockSpec((None, tq, H), lambda b, qi, ki: (b, qi, 0)),
        scratch_shapes=[
            pltpu.VMEM((nh, tq, 1), jnp.float32),   # running max  m
            pltpu.VMEM((nh, tq, 1), jnp.float32),   # running denom l
            pltpu.VMEM((nh, tq, hd), jnp.float32),  # running weighted-value accumulator
        ],
        compiler_params=pltpu.CompilerParams(
            dimension_semantics=("parallel", "parallel", "arbitrary"),
            vmem_limit_bytes=_vmem_limit_bytes(plan, cap)),
    )(q, k, v, mask_i8, w_dense_3d, b_dense)


# ----------------------------------------------------------------------------
# Plain-JAX glue: rotary embedding (matches GPT-NeoX RotaryEmbedding)
# ----------------------------------------------------------------------------
def rotary_cos_sin(seq_len, rotary_ndims, base):
    inv_freq = 1.0 / (
        base ** (jnp.arange(0, rotary_ndims, 2, dtype=jnp.float32) / rotary_ndims)
    )
    t = jnp.arange(seq_len, dtype=jnp.float32)
    freqs = jnp.einsum("i,j->ij", t, inv_freq)            # [S, rot/2]
    emb = jnp.concatenate([freqs, freqs], axis=-1)        # [S, rot]
    cos = jnp.cos(emb)[:, None, None, :]                  # [S, 1, 1, rot]
    sin = jnp.sin(emb)[:, None, None, :]
    return cos, sin


def rotate_half(x):
    x1, x2 = jnp.split(x, 2, axis=-1)
    return jnp.concatenate([-x2, x1], axis=-1)


# ----------------------------------------------------------------------------
# Full forward (mirrors SelfAttention.forward with layer_past=None, use_cache=False)
# ----------------------------------------------------------------------------
def self_attention_forward(hidden_states, attention_mask, params, num_heads,
                           rotary_pct, rotary_base, compute_dtype=jnp.bfloat16,
                           attn_tiles=None):
    S, B, H = hidden_states.shape
    hd = H // num_heads
    rot = int(hd * rotary_pct)
    norm_factor = math.sqrt(hd)

    # --- QKV projection (tiled Pallas matmul; bf16 operands by default, f32 accumulation) ---
    x2d = hidden_states.reshape(S * B, H).astype(compute_dtype)
    qkv = linear_pallas(x2d, params["w_qkv"].astype(compute_dtype),
                        params["b_qkv"])                            # [S*B, 3H] f32
    qkv = qkv.reshape(S, B, num_heads, 3 * hd)
    q = qkv[..., :hd]
    k = qkv[..., hd:2 * hd]
    v = qkv[..., 2 * hd:]

    # --- rotary position embedding (tiny elementwise; plain-JAX glue) ---
    # TODO(synk): fuse rotary + the [S,B,nh,hd]->[B,nh,S,hd] relayout into the attention
    # kernel (per-tile cos/sin blocks, pltpu.roll-style rotate_half) to remove the
    # remaining plain-JAX HBM passes over Q/K/V.
    cos, sin = rotary_cos_sin(S, rot, rotary_base)
    q_rot, q_pass = q[..., :rot], q[..., rot:]
    k_rot, k_pass = k[..., :rot], k[..., rot:]
    q = jnp.concatenate([q_rot * cos + rotate_half(q_rot) * sin, q_pass], axis=-1)
    k = jnp.concatenate([k_rot * cos + rotate_half(k_rot) * sin, k_pass], axis=-1)

    # [S, B, nh, hd] -> [B, nh, S, hd]: heads become the leading batch dim of the
    # in-kernel MXU matmuls (canonical batched dot_general layout).
    def to_bhsd(x):
        return jnp.transpose(x, (1, 2, 0, 3)).astype(compute_dtype)

    qb, kb, vb = to_bhsd(q), to_bhsd(k), to_bhsd(v)

    # Mask: [B, 1, S, S] bool -> [B, S, S] int8 (no per-head duplication, 1/4 the bytes
    # of a float32 mask); it becomes an additive bias inside the kernel.
    mask_i8 = attention_mask[:, 0].astype(jnp.int8)

    # Dense projection folded into the attention kernel: W^T split per head.
    w_dense_3d = params["w_dense"].T.reshape(num_heads, hd, H).astype(compute_dtype)
    b_dense = params["b_dense"].reshape(1, H).astype(jnp.float32)

    tq, tk = attn_tiles if attn_tiles is not None else (None, None)
    out_bsh = attention_dense_pallas(qb, kb, vb, mask_i8, w_dense_3d, b_dense,
                                     norm_factor, tq=tq, tk=tk)      # [B, S, H] f32
    out = jnp.transpose(out_bsh, (1, 0, 2))                          # [S, B, H]
    # use_cache=False -> kv_cache is None
    return out, None


# ----------------------------------------------------------------------------
# Pure-JAX reference (same math, no Pallas) for the correctness check
# ----------------------------------------------------------------------------
def reference_forward(hidden_states, attention_mask, params,
                      num_heads, rotary_pct, rotary_base):
    S, B, H = hidden_states.shape
    hd = H // num_heads
    rot = int(hd * rotary_pct)
    norm_factor = math.sqrt(hd)

    qkv = hidden_states.reshape(S * B, H) @ params["w_qkv"].T + params["b_qkv"]
    qkv = qkv.reshape(S, B, num_heads, 3 * hd)
    q, k, v = qkv[..., :hd], qkv[..., hd:2 * hd], qkv[..., 2 * hd:]

    cos, sin = rotary_cos_sin(S, rot, rotary_base)
    q_rot, q_pass = q[..., :rot], q[..., rot:]
    k_rot, k_pass = k[..., :rot], k[..., rot:]
    q = jnp.concatenate([q_rot * cos + rotate_half(q_rot) * sin, q_pass], axis=-1)
    k = jnp.concatenate([k_rot * cos + rotate_half(k_rot) * sin, k_pass], axis=-1)

    qb = q.reshape(S, B * num_heads, hd).transpose(1, 0, 2)
    kb = k.reshape(S, B * num_heads, hd).transpose(1, 0, 2)
    vb = v.reshape(S, B * num_heads, hd).transpose(1, 0, 2)

    scores = jnp.einsum("bqd,bkd->bqk", qb, kb) / norm_factor
    mask = jnp.broadcast_to(attention_mask, (B, num_heads, S, S)).reshape(
        B * num_heads, S, S
    )
    scores = jnp.where(mask, scores, -10000.0)
    probs = jax.nn.softmax(scores, axis=-1)
    ctx = jnp.einsum("bqk,bkd->bqd", probs, vb)
    ctx = ctx.reshape(B, num_heads, S, hd).transpose(2, 0, 1, 3).reshape(S, B, H)
    out = ctx.reshape(S * B, H) @ params["w_dense"].T + params["b_dense"]
    return out.reshape(S, B, H)


# ----------------------------------------------------------------------------
# Main
# ----------------------------------------------------------------------------
if __name__ == "__main__":
    # Small GPT-NeoX-like config
    S, B = 16, 2                # seq, batch
    H = 32                      # hidden_size
    num_heads = 4               # num_attention_heads
    rotary_pct = 0.25           # -> rotary_ndims = 2
    rotary_base = 10000.0

    key = jax.random.PRNGKey(0)
    k_x, k_wqkv, k_bqkv, k_wd, k_bd = jax.random.split(key, 5)

    hidden_states = jax.random.normal(k_x, (S, B, H), dtype=jnp.float32)

    # Deterministic synthetic parameters (PyTorch nn.Linear shapes: [out, in])
    params = {
        "w_qkv": jax.random.normal(k_wqkv, (3 * H, H), dtype=jnp.float32) * 0.02,
        "b_qkv": jax.random.normal(k_bqkv, (3 * H,), dtype=jnp.float32) * 0.02,
        "w_dense": jax.random.normal(k_wd, (H, H), dtype=jnp.float32) * 0.02,
        "b_dense": jax.random.normal(k_bd, (H,), dtype=jnp.float32) * 0.02,
    }

    # Causal (lower-triangular) boolean mask, True = keep
    causal = jnp.tril(jnp.ones((S, S), dtype=bool))
    attention_mask = jnp.broadcast_to(causal, (B, 1, S, S))

    ref = reference_forward(
        hidden_states, attention_mask, params, num_heads, rotary_pct, rotary_base
    )

    # --- f32 path (auto tiles) ---
    out_f32, kv_cache = self_attention_forward(
        hidden_states, attention_mask, params, num_heads, rotary_pct, rotary_base,
        compute_dtype=jnp.float32,
    )
    out_f32 = jax.block_until_ready(out_f32)
    assert out_f32.shape == (S, B, H)
    assert kv_cache is None
    assert jnp.allclose(out_f32, ref, rtol=1e-2, atol=1e-3), "f32 kernel mismatch vs reference"

    # --- f32 path with forced small q-tile (exercises the multi-q-tile grid + scratch reset) ---
    out_tiled, _ = self_attention_forward(
        hidden_states, attention_mask, params, num_heads, rotary_pct, rotary_base,
        compute_dtype=jnp.float32, attn_tiles=(8, S),
    )
    out_tiled = jax.block_until_ready(out_tiled)
    assert jnp.allclose(out_tiled, ref, rtol=1e-2, atol=1e-3), "tiled kernel mismatch vs reference"

    # --- bf16 MXU path (default): bf16 operands, f32 accumulation ---
    out_bf16, _ = self_attention_forward(
        hidden_states, attention_mask, params, num_heads, rotary_pct, rotary_base,
    )
    out_bf16 = jax.block_until_ready(out_bf16)
    assert jnp.allclose(out_bf16, ref, rtol=5e-2, atol=2e-2), "bf16 kernel mismatch vs reference"

    print("KERNEL_OK")
</pallas_src>

<mosaic_0001>
module attributes {stable_mosaic.version = 11 : i64} {
  func.func @_linear_kernel(%arg0: i32, %arg1: i32, %arg2: memref<32x32xf32, #tpu.memory_space<vmem>>, %arg3: memref<96x32xf32, #tpu.memory_space<vmem>>, %arg4: memref<1x96xf32, #tpu.memory_space<vmem>>, %arg5: memref<32x96xf32, #tpu.memory_space<vmem>>) attributes {dimension_semantics = [#tpu.dimension_semantics<parallel>, #tpu.dimension_semantics<parallel>], iteration_bounds = array<i64: 1, 1>, scalar_prefetch = 0 : i64, scratch_operands = 0 : i64, tpu.core_type = #tpu.core_type<tc>, window_params = [{transform_indices = @transform_0, window_bounds = array<i64: 32, 32>}, {transform_indices = @transform_1, window_bounds = array<i64: 96, 32>}, {transform_indices = @transform_2, window_bounds = array<i64: 1, 96>}, {transform_indices = @transform_3, window_bounds = array<i64: 32, 96>}]} {
    %c0 = arith.constant 0 : index
    %c0_0 = arith.constant 0 : index
    %0 = vector.load %arg2[%c0, %c0_0] : memref<32x32xf32, #tpu.memory_space<vmem>>, vector<32x32xf32>
    %c0_1 = arith.constant 0 : index
    %c0_2 = arith.constant 0 : index
    %1 = vector.load %arg3[%c0_1, %c0_2] : memref<96x32xf32, #tpu.memory_space<vmem>>, vector<96x32xf32>
    %cst = arith.constant dense<0.000000e+00> : vector<32x96xf32>
    %2 = tpu.matmul %0, %1, %cst {dimension_numbers = #tpu.dot_dimension_numbers<[1], [1], [0], [0], [0, 0, 1, 0], [], []>} : vector<32x32xf32>, vector<96x32xf32>, vector<32x96xf32> -> vector<32x96xf32>
    %c0_3 = arith.constant 0 : index
    %c0_4 = arith.constant 0 : index
    %3 = vector.load %arg4[%c0_3, %c0_4] : memref<1x96xf32, #tpu.memory_space<vmem>>, vector<1x96xf32>
    %4 = vector.broadcast %3 : vector<1x96xf32> to vector<32x96xf32>
    %5 = arith.addf %2, %4 : vector<32x96xf32>
    %c0_5 = arith.constant 0 : index
    %c0_6 = arith.constant 0 : index
    %6 = vector.load %arg5[%c0_5, %c0_6] : memref<32x96xf32, #tpu.memory_space<vmem>>, vector<32x96xf32>
    tpu.vector_store %arg5[%c0_5, %c0_6], %5 {strides = array<i32>} : memref<32x96xf32, #tpu.memory_space<vmem>>, vector<32x96xf32>,
    return
  }
  func.func @transform_0(%arg0: i32, %arg1: i32) -> (i32, i32) {
    %c0_i32 = arith.constant 0 : i32
    %c0_i32_0 = arith.constant 0 : i32
    return %arg0, %c0_i32 : i32, i32
  }
  func.func @transform_1(%arg0: i32, %arg1: i32) -> (i32, i32) {
    %c0_i32 = arith.constant 0 : i32
    %c0_i32_0 = arith.constant 0 : i32
    return %arg1, %c0_i32 : i32, i32
  }
  func.func @transform_2(%arg0: i32, %arg1: i32) -> (i32, i32) {
    %c0_i32 = arith.constant 0 : i32
    %c0_i32_0 = arith.constant 0 : i32
    return %c0_i32, %arg1 : i32, i32
  }
  func.func @transform_3(%arg0: i32, %arg1: i32) -> (i32, i32) {
    %c0_i32 = arith.constant 0 : i32
    return %arg0, %arg1 : i32, i32
  }
}

</mosaic_0001>

<bundles_post_ra>
// kernel: tpu_custom_call.1
= control target key start
LH: loop header
LB: loop body
LE: loop exit
PB: predicated region body
PF: predicated region fallthrough
CT: control target
= control target key end

     0   :  { %vm38_vm0 = vcmask 261120   ;;  %s434_s0 = inlined_call_operand.vmem [shape: f32[32,32], index: 0, kind: input, shape index: {}]   ;;  %s435_s1 = inlined_call_operand.vmem [shape: f32[96,32], index: 1, kind: input, shape index: {}]   ;;  %s436_s2 = inlined_call_operand.vmem [shape: f32[1,96], index: 2, kind: input, shape index: {}]   ;;  %s437_s3 = inlined_call_operand.hbm [shape: f32[32,96], index: 3, kind: output, shape index: {}]  }
   0x1   :  { %v30_v0 = vld [vmem:[%s435_s1 + $0x58] sm:$0xff]  ;;  %v29_v1 = vld [vmem:[%s435_s1 + $0x50] sm:$0xff]  ;;  %v28_v2 = vld [vmem:[%s435_s1 + $0x48] sm:$0xff] }
   0x2   :  { %226 = vmatprep.subr.msk.mxu0 %vm38_vm0, %v30_v0  ;;  %256 = vmatprep.subr.msk.mxu1 %vm38_vm0, %v30_v0  ;;  %v15_v3 = vld [vmem:[%s434_s0] sm:$0xff]  ;;  %v17_v4 = vld [vmem:[%s434_s0 + $0x10] sm:$0xff] }
   0x3   :  { %227 = vmatpush3.xpose.msk.msra.mxu0 %vm38_vm0, %v30_v0  ;;  %268 = vmatpush3.xpose.msk.msra.mxu1 %vm38_vm0, %v30_v0 }
   0x4   :  { %228 = vmatprep.subr.msk.mxu0 %vm38_vm0, %v29_v1  ;;  %257 = vmatprep.subr.msk.mxu1 %vm38_vm0, %v29_v1 }
   0x5   :  { %250 = vmatprep.mubr.msk.f32.mxu0 %vm38_vm0, %v15_v3  ;;  %253 = vmatprep.mubr.msk.f32.mxu1 %vm38_vm0, %v17_v4 }
   0x6   :  { %8 = vsyncpa [#allocation3], 0  ;;  %v27_v5 = vld [vmem:[%s435_s1 + $0x40] sm:$0xff]  ;;  %v26_v6 = vld [vmem:[%s435_s1 + $0x38] sm:$0xff]  ;;  %s305_s18 = smov [#allocation2]   ;;  %vm172_vm1 = vcmask 785408  }
   0x7   :  { %229 = vmatpush3.xpose.msk.msra.mxu0 %vm38_vm0, %v29_v1  ;;  %269 = vmatpush3.xpose.msk.msra.mxu1 %vm38_vm0, %v29_v1  ;;  %v25_v7 = vld [vmem:[%s435_s1 + $0x30] sm:$0xff]  ;;  %v24_v8 = vld [vmem:[%s435_s1 + $0x28] sm:$0xff]  ;;  %v23_v9 = vld [vmem:[%s435_s1 + $0x20] sm:$0xff]  ;;  %s182_s19 = sshll.u32 %s305_s18, 4  ;;  %s183_s19 = int_to_ptr.vmem [resolvable:$true] %s182_s19 }
   0x8   :  { %230 = vmatprep.subr.msk.mxu0 %vm38_vm0, %v28_v2  ;;  %258 = vmatprep.subr.msk.mxu1 %vm38_vm0, %v28_v2  ;;  %v22_v10 = vld [vmem:[%s435_s1 + $0x18] sm:$0xff]  ;;  %v21_v11 = vld [vmem:[%s435_s1 + $0x10] sm:$0xff]  ;;  %v20_v12 = vld [vmem:[%s435_s1 + $0x8] sm:$0xff]  ;;  %p288_p1 = scmp.lt.s32.totalorder %s183_s19, %s183_s19 }
   0x9   :  { %v19_v13 = vld [vmem:[%s435_s1] sm:$0xff]  ;;  %v16_v14 = vld [vmem:[%s434_s0 + $0x8] sm:$0xff]  ;;  %v18_v15 = vld [vmem:[%s434_s0 + $0x18] sm:$0xff]  ;;  %s283_s0 = scalar_lea.vmem %s183_s19, 512 }
   0xa   :  { %v193_v16 = vld [vmem:[%s436_s2] ss:$0 sm:$0xff]  ;;  %p284_p0 = scmp.ne.s32.totalorder %s183_s19, %s283_s0  ;;  %p289_p2 = scmp.lt.s32.totalorder %s283_s0, %s283_s0 }
   0xb   :  { %231 = vmatpush3.xpose.msk.msra.mxu0 %vm38_vm0, %v28_v2  ;;  %270 = vmatpush3.xpose.msk.msra.mxu1 %vm38_vm0, %v28_v2 }
   0xc   :  { %232 = vmatprep.subr.msk.mxu0 %vm38_vm0, %v27_v5  ;;  %259 = vmatprep.subr.msk.mxu1 %vm38_vm0, %v27_v5  ;;  %p290_p3 = por %p289_p2, %p288_p1 }
   0xe   :  { %p291_p4 = pnand %p290_p3, %p284_p0 }
   0xf   :  { %233 = vmatpush3.xpose.msk.msra.mxu0 %vm38_vm0, %v27_v5  ;;  %271 = vmatpush3.xpose.msk.msra.mxu1 %vm38_vm0, %v27_v5 }
  0x10   :  { %234 = vmatprep.subr.msk.mxu0 %vm38_vm0, %v26_v6  ;;  %260 = vmatprep.subr.msk.mxu1 %vm38_vm0, %v26_v6 }
  0x13   :  { %235 = vmatpush3.xpose.msk.msra.mxu0 %vm38_vm0, %v26_v6  ;;  %272 = vmatpush3.xpose.msk.msra.mxu1 %vm38_vm0, %v26_v6 }
  0x14   :  { %236 = vmatprep.subr.msk.mxu0 %vm38_vm0, %v25_v7  ;;  %261 = vmatprep.subr.msk.mxu1 %vm38_vm0, %v25_v7 }
  0x17   :  { %237 = vmatpush3.xpose.msk.msra.mxu0 %vm38_vm0, %v25_v7  ;;  %273 = vmatpush3.xpose.msk.msra.mxu1 %vm38_vm0, %v25_v7 }
  0x18   :  { %238 = vmatprep.subr.msk.mxu0 %vm38_vm0, %v24_v8  ;;  %262 = vmatprep.subr.msk.mxu1 %vm38_vm0, %v24_v8 }
  0x1b   :  { %239 = vmatpush3.xpose.msk.msra.mxu0 %vm38_vm0, %v24_v8  ;;  %274 = vmatpush3.xpose.msk.msra.mxu1 %vm38_vm0, %v24_v8 }
  0x1c   :  { %240 = vmatprep.subr.msk.mxu0 %vm38_vm0, %v23_v9  ;;  %263 = vmatprep.subr.msk.mxu1 %vm38_vm0, %v23_v9 }
  0x1f   :  { %241 = vmatpush3.xpose.msk.msra.mxu0 %vm38_vm0, %v23_v9  ;;  %275 = vmatpush3.xpose.msk.msra.mxu1 %vm38_vm0, %v23_v9 }
  0x20   :  { %242 = vmatprep.subr.msk.mxu0 %vm38_vm0, %v22_v10  ;;  %264 = vmatprep.subr.msk.mxu1 %vm38_vm0, %v22_v10 }
  0x23   :  { %243 = vmatpush3.xpose.msk.msra.mxu0 %vm38_vm0, %v22_v10  ;;  %276 = vmatpush3.xpose.msk.msra.mxu1 %vm38_vm0, %v22_v10 }
  0x24   :  { %244 = vmatprep.subr.msk.mxu0 %vm38_vm0, %v21_v11  ;;  %265 = vmatprep.subr.msk.mxu1 %vm38_vm0, %v21_v11 }
  0x27   :  { %245 = vmatpush3.xpose.msk.msra.mxu0 %vm38_vm0, %v21_v11  ;;  %277 = vmatpush3.xpose.msk.msra.mxu1 %vm38_vm0, %v21_v11 }
  0x28   :  { %246 = vmatprep.subr.msk.mxu0 %vm38_vm0, %v20_v12  ;;  %266 = vmatprep.subr.msk.mxu1 %vm38_vm0, %v20_v12 }
  0x2b   :  { %247 = vmatpush3.xpose.msk.msra.mxu0 %vm38_vm0, %v20_v12  ;;  %278 = vmatpush3.xpose.msk.msra.mxu1 %vm38_vm0, %v20_v12 }
  0x2c   :  { %248 = vmatprep.subr.msk.mxu0 %vm38_vm0, %v19_v13  ;;  %267 = vmatprep.subr.msk.mxu1 %vm38_vm0, %v19_v13 }
  0x2f   :  { %249 = vmatpush3.xpose.msk.msra.mxu0 %vm38_vm0, %v19_v13  ;;  %279 = vmatpush3.xpose.msk.msra.mxu1 %vm38_vm0, %v19_v13 }
  0x32   :  { %251 = vmatmul.mubr.msk.f32.vlgmr.msra.gmra.mxu0 %vm38_vm0, %v16_v14  ;;  %254 = vmatmul.mubr.msk.f32.vlgmr.msra.gmra.mxu1 %vm38_vm0, %v18_v15 }
  0xf2   :  { %v252_v17 = vpop.f32.mrf.mxu0  ;;  %v255_v18 = vpop.f32.mrf.mxu1 }
  0xf3   :  { %v159_v19 = vadd.f32 %v252_v17, %v193_v16  ;;  %v169_v20 = vadd.f32 %v255_v18, %v193_v16 }
  0xf4   :  { %v153_v21 = vpop.f32.mrf.mxu0  ;;  %v163_v22 = vpop.f32.mrf.mxu1 }
  0xf5   :  { %174 = vst.msk [vmem:[#allocation2 + $0x8] sm:$0xff] %vm172_vm1, %v159_v19  ;;  %176 = vst.msk [vmem:[#allocation2 + $0x18] sm:$0xff] %vm172_vm1, %v169_v20  ;;  %v154_v23 = vadd.f32 %v193_v16, %v153_v21  ;;  %v164_v24 = vadd.f32 %v193_v16, %v163_v22 }
  0xf7   :  { %173 = vst.msk [vmem:[#allocation2] sm:$0xff] %vm172_vm1, %v154_v23  ;;  %175 = vst.msk [vmem:[#allocation2 + $0x10] sm:$0xff] %vm172_vm1, %v164_v24 }
  0xf8   :  { %294 = shalt.err (!%p291_p4)
}
  0xf9   :  { %s306_s2 = smov 128   ;;  %s307_s20 = smov 8  }
  0xfa   :  { %188 = dma.vmem_to_hbm [thread:$0]  %s183_s19, 512, %s437_s3, [#allocation3], %s306_s2, %s306_s2, %s307_s20  }
  0xfb   :  { %303 = dma.done.wait [#allocation3], 512  }
  0xfc   :  { %304 = vsyncadd [#allocation3], 4294966784 }
  0xfd   :  { %192 = vsyncpa [#allocation3], 1 }

</bundles_post_ra>
